<compile_context>
chip_gen: v7x
topology: tpu7x:2x2x1
jax: 0.10.0
libtpu: 0.0.40
codegen_flags: <defaults>
</compile_context>

<pallas_src>
import jax
import jax.numpy as jnp
from jax.experimental import pallas as pl
from jax.experimental.pallas import tpu as pltpu


def _round_up(x, m):
    return (x + m - 1) // m * m


def _decoder_kernel(x_ref, w1_ref, b1_ref, w2_ref, b2_ref, w3_ref, b3_ref, o_ref):
    cdt = w1_ref.dtype
    # Layer 1: Linear + ReLU (bf16 MXU operands, f32 accumulation, f32 bias).
    h = jnp.dot(x_ref[...].astype(cdt), w1_ref[...], preferred_element_type=jnp.float32)
    h = jnp.maximum((h + b1_ref[...]).astype(cdt), 0)   # downcast-then-ReLU == ReLU-then-downcast
    # Layer 2: Linear + ReLU.
    h = jnp.dot(h, w2_ref[...], preferred_element_type=jnp.float32)
    h = jnp.maximum((h + b2_ref[...]).astype(cdt), 0)
    # Output layer: Linear, no activation.
    out = jnp.dot(h, w3_ref[...], preferred_element_type=jnp.float32) + b3_ref[...]
    o_ref[...] = out.astype(o_ref.dtype)


def prepare_decoder_params(params, *, lane=128, compute_dtype=jnp.bfloat16):
    """One-time (hoisted) padding + casting of the Decoder parameters.

    Zero-pads every *output* feature dim to a multiple of 128 lanes (exact: padded
    weight columns / bias entries stay 0 through bias + ReLU, padded output columns are
    sliced off after the kernel) and casts weights to the MXU-native dtype.
    Call once; reuse the result for every decoder_forward call.
    """
    E, H1 = params["w1"].shape
    H2 = params["w2"].shape[1]
    D = params["w3"].shape[1]
    H1p, H2p, Dp = (_round_up(d, lane) for d in (H1, H2, D))

    w1 = jnp.zeros((E, H1p), compute_dtype).at[:, :H1].set(params["w1"].astype(compute_dtype))
    w2 = jnp.zeros((H1p, H2p), compute_dtype).at[:H1, :H2].set(params["w2"].astype(compute_dtype))
    w3 = jnp.zeros((H2p, Dp), compute_dtype).at[:H2, :D].set(params["w3"].astype(compute_dtype))
    b1 = jnp.zeros((1, H1p), jnp.float32).at[:, :H1].set(
        params["b1"].astype(jnp.float32).reshape(1, -1))
    b2 = jnp.zeros((1, H2p), jnp.float32).at[:, :H2].set(
        params["b2"].astype(jnp.float32).reshape(1, -1))
    b3 = jnp.zeros((1, Dp), jnp.float32).at[:, :D].set(
        params["b3"].astype(jnp.float32).reshape(1, -1))
    return dict(w1=w1, b1=b1, w2=w2, b2=b2, w3=w3, b3=b3,
                sigma=params["sigma"], data_dim=D)


def decoder_forward(x, prepared, *, max_tm=512):
    """Fused Decoder MLP forward in a single Pallas kernel.

    x: (B, embedding_dim) float32
    prepared: output of prepare_decoder_params
    Returns (out (B, data_dim), sigma (data_dim,)) — matching the PyTorch forward().
    """
    B, E = x.shape
    w1, b1, w2, b2, w3, b3 = (prepared[k] for k in ("w1", "b1", "w2", "b2", "w3", "b3"))
    H1p, H2p, Dp = w1.shape[1], w2.shape[1], w3.shape[1]
    D = prepared["data_dim"]
    out_dtype = x.dtype

    # Batch tile: multiple of 16.  Small batches -> one tile; medium batches -> exactly
    # 2 tiles (keeps both v7x TensorCores busy via the "parallel" grid axis); large
    # batches -> max_tm-row tiles.  Ragged last tile handled by Pallas partial blocks.
    if B <= 256:
        tm = _round_up(B, 16)
    elif B <= 2 * max_tm:
        tm = _round_up(pl.cdiv(B, 2), 16)
    else:
        tm = max_tm
    grid_m = pl.cdiv(B, tm)

    # VMEM budget: double-buffered x/out tiles + grid-resident weights (+ headroom),
    # clamped to ~80% of this generation's physical VMEM (64 MiB v7x, 128 MiB v5e/v6e).
    w_bytes = (w1.size + w2.size + w3.size) * w1.dtype.itemsize
    b_bytes = (b1.size + b2.size + b3.size) * 4
    tile_bytes = tm * (E + Dp) * 4
    needed = 2 * tile_bytes + 2 * (w_bytes + b_bytes)
    try:
        vmem_cap = int(getattr(pltpu.get_tpu_info(), "vmem_capacity_bytes",
                               64 * 1024 * 1024))
    except Exception:
        vmem_cap = 64 * 1024 * 1024
    vmem_limit = int(min(max(2 * needed, 32 * 1024 * 1024), int(0.8 * vmem_cap)))

    flops = 2 * B * (E * H1p + H1p * H2p + H2p * Dp)
    bytes_accessed = B * E * 4 + w_bytes + b_bytes + B * Dp * 4

    out_p = pl.pallas_call(
        _decoder_kernel,
        out_shape=jax.ShapeDtypeStruct((B, Dp), out_dtype),
        grid_spec=pltpu.PrefetchScalarGridSpec(
            num_scalar_prefetch=0,
            grid=(grid_m,),
            in_specs=[
                pl.BlockSpec((tm, E), lambda i: (i, 0)),      # x tile over batch (native E)
                pl.BlockSpec((E, H1p), lambda i: (0, 0)),     # w1 (grid-resident)
                pl.BlockSpec((1, H1p), lambda i: (0, 0)),     # b1
                pl.BlockSpec((H1p, H2p), lambda i: (0, 0)),   # w2
                pl.BlockSpec((1, H2p), lambda i: (0, 0)),     # b2
                pl.BlockSpec((H2p, Dp), lambda i: (0, 0)),    # w3
                pl.BlockSpec((1, Dp), lambda i: (0, 0)),      # b3
            ],
            out_specs=pl.BlockSpec((tm, Dp), lambda i: (i, 0)),
        ),
        compiler_params=pltpu.CompilerParams(
            dimension_semantics=("parallel",),
            vmem_limit_bytes=vmem_limit,
        ),
        cost_estimate=pl.CostEstimate(
            flops=flops, transcendentals=0, bytes_accessed=bytes_accessed),
    )(x, w1, b1, w2, b2, w3, b3)

    # Only a column slice remains (skipped when data_dim is already lane-aligned).
    out = out_p if Dp == D else out_p[:, :D]
    # sigma is a Parameter returned untouched by forward() — pass through, no compute.
    return out, prepared["sigma"]


def init_decoder_params(key, embedding_dim, decompress_dims, data_dim, dtype=jnp.float32):
    """Deterministic synthetic init mirroring the module's layer shapes."""
    dims = [embedding_dim] + list(decompress_dims) + [data_dim]
    keys = jax.random.split(key, 2 * (len(dims) - 1))
    params = {}
    for li in range(len(dims) - 1):
        fan_in, fan_out = dims[li], dims[li + 1]
        scale = 1.0 / jnp.sqrt(jnp.asarray(fan_in, dtype))
        w = jax.random.uniform(keys[2 * li], (fan_in, fan_out), dtype, -scale, scale)
        b = jax.random.uniform(keys[2 * li + 1], (1, fan_out), dtype, -scale, scale)
        params[f"w{li + 1}"] = w
        params[f"b{li + 1}"] = b
    # sigma = Parameter(torch.ones(data_dim) * 0.1)
    params["sigma"] = jnp.full((data_dim,), 0.1, dtype=dtype)
    return params


def _reference_forward_bf16(x, params):
    """Pure-JAX reference with the same bf16 operand rounding + f32 accumulation."""
    def c(a):
        return a.astype(jnp.bfloat16).astype(jnp.float32)
    h = jnp.maximum(c(x) @ c(params["w1"]) + params["b1"], 0.0)
    h = jnp.maximum(c(h) @ c(params["w2"]) + params["b2"], 0.0)
    out = c(h) @ c(params["w3"]) + params["b3"]
    return out, params["sigma"]


if __name__ == "__main__":
    # Shapes consistent with the module: Decoder(embedding_dim=32, decompress_dims=(64,128), data_dim=48)
    embedding_dim = 32
    decompress_dims = (64, 128)
    data_dim = 48
    batch = 16

    key = jax.random.PRNGKey(0)
    k_x, k_p = jax.random.split(key)
    x = jax.random.normal(k_x, (batch, embedding_dim), dtype=jnp.float32)
    params = init_decoder_params(k_p, embedding_dim, decompress_dims, data_dim)

    # Hoisted one-time parameter prep (padding + bf16 cast), reused across calls.
    prepared = prepare_decoder_params(params)

    out, sigma = decoder_forward(x, prepared)
    out = jax.block_until_ready(out)
    sigma = jax.block_until_ready(sigma)

    # Sanity check against a pure-JAX reference with matching bf16 operand rounding.
    ref_out, ref_sigma = _reference_forward_bf16(x, params)
    assert out.shape == (batch, data_dim)
    assert sigma.shape == (data_dim,)
    assert jnp.allclose(out, ref_out, atol=1e-3, rtol=1e-3)
    assert jnp.allclose(sigma, ref_sigma)

    print("KERNEL_OK")
</pallas_src>

<mosaic_0001>
module attributes {stable_mosaic.version = 11 : i64} {
  func.func @_decoder_kernel(%arg0: i32, %arg1: memref<16x32xf32, #tpu.memory_space<vmem>>, %arg2: memref<32x128xbf16, #tpu.memory_space<vmem>>, %arg3: memref<1x128xf32, #tpu.memory_space<vmem>>, %arg4: memref<128x128xbf16, #tpu.memory_space<vmem>>, %arg5: memref<1x128xf32, #tpu.memory_space<vmem>>, %arg6: memref<128x128xbf16, #tpu.memory_space<vmem>>, %arg7: memref<1x128xf32, #tpu.memory_space<vmem>>, %arg8: memref<16x128xf32, #tpu.memory_space<vmem>>) attributes {dimension_semantics = [#tpu.dimension_semantics<parallel>], iteration_bounds = array<i64: 1>, scalar_prefetch = 0 : i64, scratch_operands = 0 : i64, tpu.core_type = #tpu.core_type<tc>, window_params = [{transform_indices = @transform_0, window_bounds = array<i64: 16, 32>}, {pipeline_mode = #tpu.pipeline_mode<synchronous>, transform_indices = @transform_1, window_bounds = array<i64: 32, 128>}, {pipeline_mode = #tpu.pipeline_mode<synchronous>, transform_indices = @transform_2, window_bounds = array<i64: 1, 128>}, {pipeline_mode = #tpu.pipeline_mode<synchronous>, transform_indices = @transform_3, window_bounds = array<i64: 128, 128>}, {pipeline_mode = #tpu.pipeline_mode<synchronous>, transform_indices = @transform_4, window_bounds = array<i64: 1, 128>}, {pipeline_mode = #tpu.pipeline_mode<synchronous>, transform_indices = @transform_5, window_bounds = array<i64: 128, 128>}, {pipeline_mode = #tpu.pipeline_mode<synchronous>, transform_indices = @transform_6, window_bounds = array<i64: 1, 128>}, {transform_indices = @transform_7, window_bounds = array<i64: 16, 128>}]} {
    %c0 = arith.constant 0 : index
    %c0_0 = arith.constant 0 : index
    %0 = vector.load %arg1[%c0, %c0_0] : memref<16x32xf32, #tpu.memory_space<vmem>>, vector<16x32xf32>
    %1 = arith.truncf %0 : vector<16x32xf32> to vector<16x32xbf16>
    %c0_1 = arith.constant 0 : index
    %c0_2 = arith.constant 0 : index
    %2 = vector.load %arg2[%c0_1, %c0_2] : memref<32x128xbf16, #tpu.memory_space<vmem>>, vector<32x128xbf16>
    %cst = arith.constant dense<0.000000e+00> : vector<16x128xf32>
    %3 = tpu.matmul %1, %2, %cst {dimension_numbers = #tpu.dot_dimension_numbers<[1], [0], [0], [1], [0, 0, 1, 1], [], []>} : vector<16x32xbf16>, vector<32x128xbf16>, vector<16x128xf32> -> vector<16x128xf32>
    %c0_3 = arith.constant 0 : index
    %c0_4 = arith.constant 0 : index
    %4 = vector.load %arg3[%c0_3, %c0_4] : memref<1x128xf32, #tpu.memory_space<vmem>>, vector<1x128xf32>
    %5 = vector.broadcast %4 : vector<1x128xf32> to vector<16x128xf32>
    %6 = arith.addf %3, %5 : vector<16x128xf32>
    %7 = arith.truncf %6 : vector<16x128xf32> to vector<16x128xbf16>
    %cst_5 = arith.constant 0.000000e+00 : bf16
    %8 = vector.broadcast %cst_5 : bf16 to vector<16x128xbf16>
    %9 = arith.maximumf %7, %8 : vector<16x128xbf16>
    %c0_6 = arith.constant 0 : index
    %c0_7 = arith.constant 0 : index
    %10 = vector.load %arg4[%c0_6, %c0_7] : memref<128x128xbf16, #tpu.memory_space<vmem>>, vector<128x128xbf16>
    %cst_8 = arith.constant dense<0.000000e+00> : vector<16x128xf32>
    %11 = tpu.matmul %9, %10, %cst_8 {dimension_numbers = #tpu.dot_dimension_numbers<[1], [0], [0], [1], [0, 0, 1, 1], [], []>} : vector<16x128xbf16>, vector<128x128xbf16>, vector<16x128xf32> -> vector<16x128xf32>
    %c0_9 = arith.constant 0 : index
    %c0_10 = arith.constant 0 : index
    %12 = vector.load %arg5[%c0_9, %c0_10] : memref<1x128xf32, #tpu.memory_space<vmem>>, vector<1x128xf32>
    %13 = vector.broadcast %12 : vector<1x128xf32> to vector<16x128xf32>
    %14 = arith.addf %11, %13 : vector<16x128xf32>
    %15 = arith.truncf %14 : vector<16x128xf32> to vector<16x128xbf16>
    %cst_11 = arith.constant 0.000000e+00 : bf16
    %16 = vector.broadcast %cst_11 : bf16 to vector<16x128xbf16>
    %17 = arith.maximumf %15, %16 : vector<16x128xbf16>
    %c0_12 = arith.constant 0 : index
    %c0_13 = arith.constant 0 : index
    %18 = vector.load %arg6[%c0_12, %c0_13] : memref<128x128xbf16, #tpu.memory_space<vmem>>, vector<128x128xbf16>
    %cst_14 = arith.constant dense<0.000000e+00> : vector<16x128xf32>
    %19 = tpu.matmul %17, %18, %cst_14 {dimension_numbers = #tpu.dot_dimension_numbers<[1], [0], [0], [1], [0, 0, 1, 1], [], []>} : vector<16x128xbf16>, vector<128x128xbf16>, vector<16x128xf32> -> vector<16x128xf32>
    %c0_15 = arith.constant 0 : index
    %c0_16 = arith.constant 0 : index
    %20 = vector.load %arg7[%c0_15, %c0_16] : memref<1x128xf32, #tpu.memory_space<vmem>>, vector<1x128xf32>
    %21 = vector.broadcast %20 : vector<1x128xf32> to vector<16x128xf32>
    %22 = arith.addf %19, %21 : vector<16x128xf32>
    %c0_17 = arith.constant 0 : index
    %c0_18 = arith.constant 0 : index
    %23 = vector.load %arg8[%c0_17, %c0_18] : memref<16x128xf32, #tpu.memory_space<vmem>>, vector<16x128xf32>
    tpu.vector_store %arg8[%c0_17, %c0_18], %22 {strides = array<i32>} : memref<16x128xf32, #tpu.memory_space<vmem>>, vector<16x128xf32>,
    return
  }
  func.func @transform_0(%arg0: i32) -> (i32, i32) {
    %c0_i32 = arith.constant 0 : i32
    %c0_i32_0 = arith.constant 0 : i32
    return %arg0, %c0_i32 : i32, i32
  }
  func.func @transform_1(%arg0: i32) -> (i32, i32) {
    %c0_i32 = arith.constant 0 : i32
    %c0_i32_0 = arith.constant 0 : i32
    %c0_i32_1 = arith.constant 0 : i32
    return %c0_i32, %c0_i32_0 : i32, i32
  }
  func.func @transform_2(%arg0: i32) -> (i32, i32) {
    %c0_i32 = arith.constant 0 : i32
    %c0_i32_0 = arith.constant 0 : i32
    %c0_i32_1 = arith.constant 0 : i32
    return %c0_i32, %c0_i32_0 : i32, i32
  }
  func.func @transform_3(%arg0: i32) -> (i32, i32) {
    %c0_i32 = arith.constant 0 : i32
    %c0_i32_0 = arith.constant 0 : i32
    %c0_i32_1 = arith.constant 0 : i32
    return %c0_i32, %c0_i32_0 : i32, i32
  }
  func.func @transform_4(%arg0: i32) -> (i32, i32) {
    %c0_i32 = arith.constant 0 : i32
    %c0_i32_0 = arith.constant 0 : i32
    %c0_i32_1 = arith.constant 0 : i32
    return %c0_i32, %c0_i32_0 : i32, i32
  }
  func.func @transform_5(%arg0: i32) -> (i32, i32) {
    %c0_i32 = arith.constant 0 : i32
    %c0_i32_0 = arith.constant 0 : i32
    %c0_i32_1 = arith.constant 0 : i32
    return %c0_i32, %c0_i32_0 : i32, i32
  }
  func.func @transform_6(%arg0: i32) -> (i32, i32) {
    %c0_i32 = arith.constant 0 : i32
    %c0_i32_0 = arith.constant 0 : i32
    %c0_i32_1 = arith.constant 0 : i32
    return %c0_i32, %c0_i32_0 : i32, i32
  }
  func.func @transform_7(%arg0: i32) -> (i32, i32) {
    %c0_i32 = arith.constant 0 : i32
    %c0_i32_0 = arith.constant 0 : i32
    return %arg0, %c0_i32 : i32, i32
  }
}

</mosaic_0001>

<bundles_post_ra>
// kernel: tpu_custom_call.1
= control target key start
LH: loop header
LB: loop body
LE: loop exit
PB: predicated region body
PF: predicated region fallthrough
CT: control target
= control target key end

     0   :  { %12 = vsyncpa [#allocation3], 0  ;;  %s809_s0 = inlined_call_operand.hbm [shape: f32[16,32], index: 0, kind: input, shape index: {}]   ;;  %s810_s1 = inlined_call_operand.hbm [shape: bf16[32,128], index: 1, kind: input, shape index: {}]   ;;  %s811_s2 = inlined_call_operand.vmem [shape: f32[1,128], index: 2, kind: input, shape index: {}]   ;;  %s812_s3 = inlined_call_operand.hbm [shape: bf16[128,128], index: 3, kind: input, shape index: {}]   ;;  %s813_s4 = inlined_call_operand.vmem [shape: f32[1,128], index: 4, kind: input, shape index: {}]   ;;  %s814_s5 = inlined_call_operand.hbm [shape: bf16[128,128], index: 5, kind: input, shape index: {}]   ;;  %s815_s6 = inlined_call_operand.vmem [shape: f32[1,128], index: 6, kind: input, shape index: {}]   ;;  %s816_s7 = inlined_call_operand.hbm [shape: f32[16,128], index: 7, kind: output, shape index: {}]  }
   0x1   :  { %13 = vsyncpa [#allocation6], 0 }
   0x2   :  { %14 = vsyncpa [#allocation9], 0 }
   0x3   :  { %15 = vsyncpa [#allocation4], 0  ;;  %s642_s24 = smov [#allocation5]   ;;  %s524_s28 = scalar_lea.hbm %s810_s1, 256 }
   0x4   :  { %s33_s25 = sshll.u32 %s642_s24, 4  ;;  %p525_p0 = scmp.ne.s32.totalorder %s810_s1, %s524_s28  ;;  %s34_s25 = int_to_ptr.vmem [resolvable:$true] %s33_s25 }
   0x5   :  { %p528_p1 = scmp.lt.u32.totalorder %s524_s28, %s810_s1 }
   0x7   :  { %p530_p2 = pnand %p528_p1, %p525_p0 }
   0x9   :  { %533 = shalt.err (!%p530_p2)
}
   0xa   :  { %s534_s10 = scalar_lea.vmem %s34_s25, 256  ;;  %p539_p4 = scmp.lt.s32.totalorder %s34_s25, %s34_s25 }
   0xb   :  { %p535_p3 = scmp.ne.s32.totalorder %s34_s25, %s534_s10  ;;  %p540_p5 = scmp.lt.s32.totalorder %s534_s10, %s534_s10 }
   0xd   :  { %p541_p6 = por %p540_p5, %p539_p4 }
   0xf   :  { %p542_p7 = pnand %p541_p6, %p535_p3 }
  0x11   :  { %545 = shalt.err (!%p542_p7)
}
  0x12   :  { %s643_s11 = smov 64   ;;  %s644_s12 = smov 4  }
  0x13   :  { %39 = dma.hbm_to_vmem [thread:$0]  %s810_s1, 256, %s34_s25, [#allocation6], %s643_s11, %s643_s11, %s644_s12  }
  0x14   :  { %s645_s15 = smov [#allocation2]   ;;  %s546_s19 = scalar_lea.hbm %s809_s0, 256 }
  0x15   :  { %s21_s16 = sshll.u32 %s645_s15, 4  ;;  %p547_p8 = scmp.ne.s32.totalorder %s809_s0, %s546_s19  ;;  %s22_s16 = int_to_ptr.vmem [resolvable:$true] %s21_s16 }
  0x16   :  { %p550_p9 = scmp.lt.u32.totalorder %s546_s19, %s809_s0 }
  0x18   :  { %p552_p10 = pnand %p550_p9, %p547_p8 }
  0x1a   :  { %555 = shalt.err (!%p552_p10)
}
  0x1b   :  { %s556_s24 = scalar_lea.vmem %s22_s16, 256  ;;  %p561_p12 = scmp.lt.s32.totalorder %s22_s16, %s22_s16 }
  0x1c   :  { %p557_p11 = scmp.ne.s32.totalorder %s22_s16, %s556_s24  ;;  %p562_p13 = scmp.lt.s32.totalorder %s556_s24, %s556_s24 }
  0x1e   :  { %p563_p0 = por %p562_p13, %p561_p12 }
  0x20   :  { %p564_p1 = pnand %p563_p0, %p557_p11 }
  0x22   :  { %567 = shalt.err (!%p564_p1)
}
  0x23   :  { %s646_s1 = smov 128   ;;  %s647_s25 = smov 8  }
  0x24   :  { %27 = dma.hbm_to_vmem [thread:$0]  %s809_s0, 256, %s22_s16, [#allocation3], %s646_s1, %s646_s1, %s647_s25  }
  0x25   :  { %s648_s28 = smov [#allocation7]   ;;  %s649_s30 = smov [#allocation8]  }
  0x26   :  { %s47_s29 = sshll.u32 %s648_s28, 4  ;;  %s61_s8 = sshll.u32 %s649_s30, 4  ;;  %s48_s29 = int_to_ptr.vmem [resolvable:$true] %s47_s29  ;;  %s724_s8 = int_to_ptr.vmem [resolvable:$true] %s61_s8 }
  0x27   :  { %s568_s13 = scalar_lea.hbm %s812_s3, 1024 }
  0x28   :  { %p569_p2 = scmp.ne.s32.totalorder %s812_s3, %s568_s13  ;;  %p572_p3 = scmp.lt.u32.totalorder %s568_s13, %s812_s3 }
  0x2a   :  { %p574_p4 = pnand %p572_p3, %p569_p2 }
  0x2c   :  { %577 = shalt.err (!%p574_p4)
}
  0x2d   :  { %s578_s0 = scalar_lea.vmem %s48_s29, 1024  ;;  %p583_p6 = scmp.lt.s32.totalorder %s48_s29, %s48_s29 }
  0x2e   :  { %p579_p5 = scmp.ne.s32.totalorder %s48_s29, %s578_s0  ;;  %p584_p7 = scmp.lt.s32.totalorder %s578_s0, %s578_s0 }
  0x30   :  { %p585_p8 = por %p584_p7, %p583_p6 }
  0x32   :  { %p586_p9 = pnand %p585_p8, %p579_p5 }
  0x34   :  { %589 = shalt.err (!%p586_p9)
}
  0x35   :  { %53 = dma.hbm_to_vmem [thread:$0]  %s812_s3, 1024, %s48_s29, [#allocation6], %s643_s11, %s643_s11, %s644_s12  }
  0x36   :  { %s590_s22 = scalar_lea.hbm %s814_s5, 1024 }
  0x37   :  { %p591_p10 = scmp.ne.s32.totalorder %s814_s5, %s590_s22  ;;  %p594_p11 = scmp.lt.u32.totalorder %s590_s22, %s814_s5 }
  0x39   :  { %p596_p12 = pnand %p594_p11, %p591_p10 }
  0x3b   :  { %599 = shalt.err (!%p596_p12)
}
  0x3c   :  { %s600_s28 = scalar_lea.vmem %s724_s8, 1024  ;;  %p605_p0 = scmp.lt.s32.totalorder %s724_s8, %s724_s8 }
  0x3d   :  { %p601_p13 = scmp.ne.s32.totalorder %s724_s8, %s600_s28  ;;  %p606_p1 = scmp.lt.s32.totalorder %s600_s28, %s600_s28 }
  0x3f   :  { %p607_p2 = por %p606_p1, %p605_p0 }
  0x41   :  { %p608_p3 = pnand %p607_p2, %p601_p13 }
  0x43   :  { %611 = shalt.err (!%p608_p3)
}
  0x44   :  { %67 = dma.hbm_to_vmem [thread:$0]  %s814_s5, 1024, %s724_s8, [#allocation9], %s643_s11, %s643_s11, %s644_s12  }
  0x45   :  { %634 = dma.done.wait [#allocation3], 256  }
  0x46   :  { %635 = vsyncadd [#allocation3], 4294967040 }
  0x47   :  { %636 = dma.done.wait [#allocation6], 1280  }
  0x48   :  { %637 = vsyncadd [#allocation6], 4294966016 }
  0x49   :  { %638 = dma.done.wait [#allocation9], 1024  }
  0x4a   :  { %639 = vsyncadd [#allocation9], 4294966272  ;;  %v650_v0 = vmov 0.0   ;;  %vm651_vm0 = vmmov 0   ;;  %v506_v1 = vld [vmem:[#allocation5] sm:$0xff]   ;;  %v507_v2 = vld [vmem:[#allocation5 + $0x8] sm:$0xff]  }
  0x4b   :  { %446 = vmatprep.subr.bf16.mxu0 %v650_v0  ;;  %450 = vmatprep.mubr.msk.bf16.mxu0 %vm651_vm0, %v650_v0  ;;  %v83_v3 = vld [vmem:[#allocation2] sm:$0xff]  ;;  %v84_v4 = vld [vmem:[#allocation2 + $0x8] sm:$0xff]  ;;  %vm109_vm1 = vcmask 261120   ;;  %v510_v8 = vld [vmem:[#allocation7 + $0x10] sm:$0xff]   ;;  %v652_v28 = vmov 0   ;;  %s653_s9 = smov [#allocation10]  }
  0x4c   :  { %454 = vmatprep.subr.bf16.mxu1 %v650_v0  ;;  %470 = vmatprep.mubr.msk.bf16.mxu1 %vm651_vm0, %v650_v0  ;;  %v508_v5 = vld [vmem:[#allocation7] sm:$0xff]   ;;  %v85_v6 = vpack.c.bf16 %v84_v4, %v83_v3  ;;  %v509_v7 = vld [vmem:[#allocation7 + $0x8] sm:$0xff]   ;;  %v511_v9 = vld [vmem:[#allocation7 + $0x18] sm:$0xff]   ;;  %s389_s10 = sshll.u32 %s653_s9, 4  ;;  %s390_s10 = int_to_ptr.vmem [resolvable:$true] %s389_s10 }
  0x4d   :  { %447 = vmatpush3.bf16.msra.mxu0 %v506_v1  ;;  %455 = vmatpush3.bf16.msra.mxu1 %v508_v5  ;;  %v512_v10 = vld [vmem:[#allocation7 + $0x20] sm:$0xff]   ;;  %v513_v11 = vld [vmem:[#allocation7 + $0x28] sm:$0xff]   ;;  %v514_v12 = vld [vmem:[#allocation7 + $0x30] sm:$0xff]   ;;  %p617_p5 = scmp.lt.s32.totalorder %s390_s10, %s390_s10 }
  0x4e   :  { %448 = vmatprep.subr.bf16.mxu0 %v650_v0  ;;  %456 = vmatprep.subr.bf16.mxu1 %v650_v0  ;;  %v515_v13 = vld [vmem:[#allocation7 + $0x38] sm:$0xff]   ;;  %v516_v14 = vld [vmem:[#allocation8] sm:$0xff]   ;;  %v517_v15 = vld [vmem:[#allocation8 + $0x8] sm:$0xff]  }
  0x4f   :  { %v518_v16 = vld [vmem:[#allocation8 + $0x10] sm:$0xff]   ;;  %v519_v17 = vld [vmem:[#allocation8 + $0x18] sm:$0xff]   ;;  %v520_v18 = vld [vmem:[#allocation8 + $0x20] sm:$0xff]  }
  0x50   :  { %v521_v19 = vld [vmem:[#allocation8 + $0x28] sm:$0xff]   ;;  %v403_v20 = vld [vmem:[%s811_s2] ss:$0 sm:$0xff]  ;;  %v522_v30 = vld [vmem:[#allocation8 + $0x30] sm:$0xff]  }
  0x51   :  { %449 = vmatpush3.bf16.msra.mxu0 %v507_v2  ;;  %457 = vmatpush3.bf16.msra.mxu1 %v509_v7  ;;  %v523_v31 = vld [vmem:[#allocation8 + $0x38] sm:$0xff]   ;;  %v407_v32 = vld [vmem:[%s813_s4] ss:$0 sm:$0xff]  ;;  %s612_s4 = scalar_lea.vmem %s390_s10, 256 }
  0x52   :  { %474 = vmatprep.subr.bf16.mxu0 %v650_v0  ;;  %458 = vmatprep.subr.bf16.mxu1 %v650_v0  ;;  %v416_v41 = vld [vmem:[%s815_s6] ss:$0 sm:$0xff]  ;;  %p613_p4 = scmp.ne.s32.totalorder %s390_s10, %s612_s4  ;;  %p618_p6 = scmp.lt.s32.totalorder %s612_s4, %s612_s4 }
  0x54   :  { %451 = vmatmul.mubr.msk.bf16.vlgmr.msra.gmra.mrb[0].mxu0 %vm109_vm1, %v85_v6  ;;  %p619_p7 = por %p618_p6, %p617_p5 }
  0x55   :  { %490 = vmatprep.mubr.msk.bf16.mxu0 %vm651_vm0, %v650_v0  ;;  %459 = vmatpush3.bf16.msra.mxu1 %v510_v8 }
  0x56   :  { %460 = vmatprep.subr.bf16.mxu1 %v650_v0  ;;  %475 = vmatpush3.bf16.msra.mxu0 %v516_v14  ;;  %p620_p8 = pnand %p619_p7, %p613_p4 }
  0x57   :  { %476 = vmatprep.subr.bf16.mxu0 %v650_v0 }
  0x59   :  { %461 = vmatpush3.bf16.msra.mxu1 %v511_v9 }
  0x5a   :  { %462 = vmatprep.subr.bf16.mxu1 %v650_v0  ;;  %477 = vmatpush3.bf16.msra.mxu0 %v517_v15 }
  0x5b   :  { %478 = vmatprep.subr.bf16.mxu0 %v650_v0 }
  0x5d   :  { %463 = vmatpush3.bf16.msra.mxu1 %v512_v10 }
  0x5e   :  { %464 = vmatprep.subr.bf16.mxu1 %v650_v0  ;;  %479 = vmatpush3.bf16.msra.mxu0 %v518_v16 }
  0x5f   :  { %480 = vmatprep.subr.bf16.mxu0 %v650_v0 }
  0x61   :  { %465 = vmatpush3.bf16.msra.mxu1 %v513_v11 }
  0x62   :  { %466 = vmatprep.subr.bf16.mxu1 %v650_v0  ;;  %481 = vmatpush3.bf16.msra.mxu0 %v519_v17 }
  0x63   :  { %482 = vmatprep.subr.bf16.mxu0 %v650_v0 }
  0x65   :  { %467 = vmatpush3.bf16.msra.mxu1 %v514_v12 }
  0x66   :  { %468 = vmatprep.subr.bf16.mxu1 %v650_v0  ;;  %483 = vmatpush3.bf16.msra.mxu0 %v520_v18 }
  0x67   :  { %484 = vmatprep.subr.bf16.mxu0 %v650_v0 }
  0x69   :  { %469 = vmatpush3.bf16.msra.mxu1 %v515_v13 }
  0x6a   :  { %485 = vmatpush3.bf16.msra.mxu0 %v521_v19 }
  0x6b   :  { %486 = vmatprep.subr.bf16.mxu0 %v650_v0 }
  0x6e   :  { %487 = vmatpush3.bf16.msra.mxu0 %v522_v30 }
  0x6f   :  { %488 = vmatprep.subr.bf16.mxu0 %v650_v0 }
  0x72   :  { %489 = vmatpush3.bf16.msra.mxu0 %v523_v31 }
 0x127   :  { %v147_v21 = vpop.f32.mrb[0].mxu0 }
 0x128   :  { %v452_v22 = vpop.f32.mrb[1].mxu0  ;;  %v148_v24 = vadd.f32 %v403_v20, %v147_v21 }
 0x129   :  { %v150_v23 = vpop.f32.mrb[2].mxu0 }
 0x12a   :  { %v151_v25 = vadd.f32 %v403_v20, %v150_v23  ;;  %v453_v26 = vpop.f32.mrb[3].mxu0 }
 0x12c   :  { %v154_v27 = vpack.c.bf16 %v151_v25, %v148_v24 }
 0x12e   :  { %v155_v29 = vmax.bf16 %v652_v28, %v154_v27 }
 0x130   :  { %471 = vmatmul.mubr.bf16.vlgmr.msra.gmra.mrb[0].mxu1 %v155_v29 }
 0x203   :  { %v261_v33 = vpop.f32.mrb[0].mxu1 }
 0x204   :  { %v472_v34 = vpop.f32.mrb[1].mxu1  ;;  %v262_v36 = vadd.f32 %v407_v32, %v261_v33 }
 0x205   :  { %v264_v35 = vpop.f32.mrb[2].mxu1 }
 0x206   :  { %v265_v37 = vadd.f32 %v407_v32, %v264_v35  ;;  %v473_v38 = vpop.f32.mrb[3].mxu1 }
 0x208   :  { %v268_v39 = vpack.c.bf16 %v265_v37, %v262_v36 }
 0x20a   :  { %v269_v40 = vmax.bf16 %v652_v28, %v268_v39 }
 0x20c   :  { %491 = vmatmul.mubr.bf16.vlgmr.msra.gmra.mrb[4].mxu0 %v269_v40 }
 0x2df   :  { %v375_v42 = vpop.f32.mrb[4].mxu0 }
 0x2e0   :  { %v376_v43 = vadd.f32 %v416_v41, %v375_v42  ;;  %v492_v44 = vpop.f32.mrb[5].mxu0 }
 0x2e1   :  { %v378_v45 = vpop.f32.mrb[6].mxu0 }
 0x2e2   :  { %382 = vst [vmem:[#allocation10] sm:$0xff] %v376_v43  ;;  %v379_v46 = vadd.f32 %v416_v41, %v378_v45  ;;  %v493_v47 = vpop.f32.mrb[7].mxu0 }
 0x2e4   :  { %383 = vst [vmem:[#allocation10 + $0x8] sm:$0xff] %v379_v46 }
 0x2e5   :  { %623 = shalt.err (!%p620_p8)
}
 0x2e6   :  { %s624_s14 = scalar_lea.hbm %s816_s7, 256 }
 0x2e7   :  { %p625_p9 = scmp.ne.s32.totalorder %s816_s7, %s624_s14  ;;  %p628_p10 = scmp.lt.u32.totalorder %s624_s14, %s816_s7 }
 0x2e9   :  { %p630_p11 = pnand %p628_p10, %p625_p9 }
 0x2eb   :  { %633 = shalt.err (!%p630_p11)
}
 0x2ec   :  { %395 = dma.vmem_to_hbm [thread:$0]  %s390_s10, 256, %s816_s7, [#allocation4], %s646_s1, %s646_s1, %s647_s25  }
 0x2ed   :  { %640 = dma.done.wait [#allocation4], 256  }
 0x2ee   :  { %641 = vsyncadd [#allocation4], 4294967040 }
 0x2ef   :  { %399 = vsyncpa [#allocation3], 1 }
 0x2f0   :  { %400 = vsyncpa [#allocation6], 1 }
 0x2f1   :  { %401 = vsyncpa [#allocation9], 1 }
 0x2f2   :  { %402 = vsyncpa [#allocation4], 1 }

</bundles_post_ra>
